<compile_context>
chip_gen: v5e
topology: v5e:2x2
jax: 0.10.0
libtpu: 0.0.40
codegen_flags: <defaults>
</compile_context>

<pallas_src>
import functools

import jax
import jax.numpy as jnp
from jax.experimental import pallas as pl
from jax.experimental.pallas import tpu as pltpu

_LANE = 128
_SUBLANE = 8


def _layer_dims(input_dim):
    # in -> 64 -> 32 -> 16 -> 8 -> 16 -> 32 -> 64 -> in
    return [input_dim, 64, 32, 16, 8, 16, 32, 64, input_dim]


def _round_up(x, m):
    return ((x + m - 1) // m) * m


def _device_tiling_policy():
    """(num_tensorcores_to_split_over, max_rows_per_batch_tile)."""
    kind = ""
    devs = jax.devices()
    if devs:
        kind = (getattr(devs[0], "device_kind", "") or "").lower()
    if "v7" in kind:
        # v7x: 2 TensorCores per chip -> want an even number of grid steps.
        return 2, 2048
    # v5e / v6e: single TC -> one big tile per step amortizes grid overhead.
    return 1, 4096


def _pick_batch_tile(batch, num_cores, tile_cap):
    """Batch-tile rows: multiple of 8 sublanes, steps a multiple of num_cores,
    tile no larger than tile_cap rows."""
    steps = max(1, -(-batch // tile_cap))
    steps = max(steps, num_cores)
    steps = -(-steps // num_cores) * num_cores  # multiple of num_cores
    bt = _round_up(max(1, -(-batch // steps)), _SUBLANE)
    return bt


def _build_layers(weights, biases):
    """weights[i]: [in, out] (pre-transposed), biases[i]: [out].

    Returns list of (w_f32 [in,out], b_f32 [out], relu_after: bool) with the
    bottleneck pair (encoder output -> first decoder layer, no ReLU between
    them in the PyTorch Sequential) algebraically fused into one layer.
    """
    n = len(weights)
    # ReLU follows every Linear except the encoder output (idx n//2-1) and the
    # final decoder output (idx n-1) — matches nn.Sequential in the spec.
    relu = [i not in (n // 2 - 1, n - 1) for i in range(n)]
    layers = []
    i = 0
    while i < n:
        w = jnp.asarray(weights[i], jnp.float32)
        b = jnp.asarray(biases[i], jnp.float32)
        if (not relu[i]) and i + 1 < n:
            # Exact fusion: (x@W_i + b_i)@W_{i+1} + b_{i+1}
            w_next = jnp.asarray(weights[i + 1], jnp.float32)
            b_next = jnp.asarray(biases[i + 1], jnp.float32)
            w = w @ w_next
            b = b @ w_next + b_next
            r = relu[i + 1]
            i += 2
        else:
            r = relu[i]
            i += 1
        layers.append((w, b, r))
    return layers


def _pack_params(layers, param_dtype):
    """Pack weights into a [n_layers, 128, 128] slab (param_dtype) and biases
    into a [round_up(n_layers, 8), 128] f32 slab, zero-padded.  Zero padding
    keeps the 128-lane activation path exact."""
    n = len(layers)
    w_slab = jnp.zeros((n, _LANE, _LANE), param_dtype)
    b_slab = jnp.zeros((_round_up(n, _SUBLANE), _LANE), jnp.float32)
    relu_flags = []
    for i, (w, b, r) in enumerate(layers):
        d_in, d_out = w.shape
        assert d_in <= _LANE and d_out <= _LANE
        w_slab = w_slab.at[i, :d_in, :d_out].set(w.astype(param_dtype))
        b_slab = b_slab.at[i, :d_out].set(b)
        relu_flags.append(bool(r))
    return w_slab, b_slab, tuple(relu_flags)


def _autoencoder_kernel(x_ref, w_ref, b_ref, o_ref, *, relu_flags):
    # x_ref: [bt, 128] f32 (feature dim zero-padded to 128 lanes)
    # w_ref: [n_layers, 128, 128] param_dtype, resident across the grid
    # b_ref: [round_up(n_layers,8), 128] f32, resident across the grid
    h = x_ref[...].astype(jnp.float32)
    for i, relu in enumerate(relu_flags):
        w = w_ref[i]                      # full [128, 128] MXU tile, no masking
        b = b_ref[i:i + 1, :]             # [1, 128] f32
        h = jnp.dot(h.astype(w.dtype), w,
                    preferred_element_type=jnp.float32) + b
        if relu:
            h = jnp.maximum(h, 0.0)
    o_ref[...] = h.astype(o_ref.dtype)    # full-lane, unmasked store


def _forward_impl(x, w_slab, b_slab, *, relu_flags, input_dim, num_cores,
                  tile_cap):
    batch = x.shape[0]

    # Zero-pad feature dim to 128 lanes (exact: padded weight rows are zero).
    if input_dim < _LANE:
        x = jnp.pad(x, ((0, 0), (0, _LANE - input_dim)))

    bt = _pick_batch_tile(batch, num_cores, tile_cap)
    batch_p = _round_up(batch, bt)
    if batch_p != batch:
        x = jnp.pad(x, ((0, batch_p - batch), (0, 0)))
    grid = (batch_p // bt,)

    kernel = functools.partial(_autoencoder_kernel, relu_flags=relu_flags)

    out = pl.pallas_call(
        kernel,
        out_shape=jax.ShapeDtypeStruct((batch_p, _LANE), x.dtype),
        grid_spec=pltpu.PrefetchScalarGridSpec(
            num_scalar_prefetch=0,
            grid=grid,
            in_specs=[
                pl.BlockSpec((bt, _LANE), lambda i: (i, 0)),
                # Packed parameter slabs: full-array blocks, constant
                # index_map -> fetched once, resident across the grid.
                pl.BlockSpec(w_slab.shape, lambda i: (0, 0, 0)),
                pl.BlockSpec(b_slab.shape, lambda i: (0, 0)),
            ],
            out_specs=pl.BlockSpec((bt, _LANE), lambda i: (i, 0)),
        ),
        compiler_params=pltpu.CompilerParams(
            dimension_semantics=("parallel",),
        ),
    )(x, w_slab, b_slab)

    return out[:batch, :input_dim]


def make_anomaly_detection_forward(weights, biases, param_dtype=jnp.bfloat16):
    """Pack parameters once and return a jitted forward(x) -> reconstruction."""
    input_dim = weights[0].shape[0]
    # TODO(synk): K-tile the first/last layers if input_dim > 128; the demo
    # model (and typical anomaly-detection feature vectors) fit in one tile.
    assert input_dim <= _LANE, "input_dim > 128 not supported by this kernel"

    layers = _build_layers(weights, biases)
    w_slab, b_slab, relu_flags = _pack_params(layers, param_dtype)
    num_cores, tile_cap = _device_tiling_policy()

    fwd = jax.jit(functools.partial(
        _forward_impl, relu_flags=relu_flags, input_dim=input_dim,
        num_cores=num_cores, tile_cap=tile_cap))

    def forward(x):
        return fwd(x, w_slab, b_slab)

    return forward


def anomaly_detection_forward(x, weights, biases, param_dtype=jnp.bfloat16):
    """One-shot convenience wrapper (packs params on every call)."""
    return make_anomaly_detection_forward(weights, biases, param_dtype)(x)


def init_params(input_dim, key):
    """Deterministic init matching nn.Linear shapes (W: [out,in], b: [out]);
    weights are returned pre-transposed to [in, out] for the kernel."""
    dims = _layer_dims(input_dim)
    weights, biases = [], []
    for i in range(len(dims) - 1):
        fan_in, fan_out = dims[i], dims[i + 1]
        key, kw, kb = jax.random.split(key, 3)
        bound = 1.0 / (fan_in ** 0.5)
        w = jax.random.uniform(kw, (fan_out, fan_in), jnp.float32, -bound, bound)
        b = jax.random.uniform(kb, (fan_out,), jnp.float32, -bound, bound)
        weights.append(w.T)  # [in, out]
        biases.append(b)
    return weights, biases


def reference_forward(x, weights, biases):
    """Pure-JAX f32 reference of the PyTorch forward (unfused)."""
    h = x
    n = len(weights)
    for i, (w, b) in enumerate(zip(weights, biases)):
        h = h @ w + b
        if i not in (n // 2 - 1, n - 1):
            h = jnp.maximum(h, 0.0)
    return h


def reference_forward_bf16(x, weights, biases):
    """Pure-JAX emulation of the kernel's compute path (fused bottleneck,
    bf16 matmuls with f32 accumulation, f32 bias/ReLU).  Zero-padded lanes in
    the kernel contribute exactly zero, so this matches the kernel bit-path."""
    layers = _build_layers(weights, biases)
    h = x.astype(jnp.float32)
    for w, b, relu in layers:
        h = jnp.dot(h.astype(jnp.bfloat16), w.astype(jnp.bfloat16),
                    preferred_element_type=jnp.float32) + b
        if relu:
            h = jnp.maximum(h, 0.0)
    return h


if __name__ == "__main__":
    key = jax.random.PRNGKey(0)
    input_dim = 32
    batch = 64

    kx, kp = jax.random.split(key)
    x = jax.random.normal(kx, (batch, input_dim), jnp.float32)
    weights, biases = init_params(input_dim, kp)

    forward = make_anomaly_detection_forward(weights, biases)
    out = jax.block_until_ready(forward(x))
    assert out.shape == (batch, input_dim)

    ref_bf16 = reference_forward_bf16(x, weights, biases)
    ref_f32 = reference_forward(x, weights, biases)
    assert jnp.allclose(out, ref_bf16, atol=2e-3, rtol=2e-3), \
        "mismatch vs bf16-emulated reference"
    assert jnp.allclose(out, ref_f32, atol=3e-2, rtol=3e-2), \
        "mismatch vs f32 reference"

    print("KERNEL_OK")
</pallas_src>

<mosaic_0001>
module attributes {stable_mosaic.version = 11 : i64} {
  func.func @_autoencoder_kernel(%arg0: i32, %arg1: memref<64x128xf32, #tpu.memory_space<vmem>>, %arg2: memref<7x128x128xbf16, #tpu.memory_space<vmem>>, %arg3: memref<8x128xf32, #tpu.memory_space<vmem>>, %arg4: memref<64x128xf32, #tpu.memory_space<vmem>>) attributes {dimension_semantics = [#tpu.dimension_semantics<parallel>], iteration_bounds = array<i64: 1>, scalar_prefetch = 0 : i64, scratch_operands = 0 : i64, tpu.core_type = #tpu.core_type<tc>, window_params = [{transform_indices = @transform_0, window_bounds = array<i64: 64, 128>}, {pipeline_mode = #tpu.pipeline_mode<synchronous>, transform_indices = @transform_1, window_bounds = array<i64: 7, 128, 128>}, {pipeline_mode = #tpu.pipeline_mode<synchronous>, transform_indices = @transform_2, window_bounds = array<i64: 8, 128>}, {transform_indices = @transform_3, window_bounds = array<i64: 64, 128>}]} {
    %c0 = arith.constant 0 : index
    %c0_0 = arith.constant 0 : index
    %0 = vector.load %arg1[%c0, %c0_0] : memref<64x128xf32, #tpu.memory_space<vmem>>, vector<64x128xf32>
    %c0_1 = arith.constant 0 : index
    %c0_2 = arith.constant 0 : index
    %c0_3 = arith.constant 0 : index
    %1 = vector.load %arg2[%c0_1, %c0_2, %c0_3] : memref<7x128x128xbf16, #tpu.memory_space<vmem>>, vector<1x128x128xbf16>
    %2 = vector.shape_cast %1 : vector<1x128x128xbf16> to vector<128x128xbf16>
    %c0_4 = arith.constant 0 : index
    %c0_5 = arith.constant 0 : index
    %3 = vector.load %arg3[%c0_4, %c0_5] : memref<8x128xf32, #tpu.memory_space<vmem>>, vector<1x128xf32>
    %4 = arith.truncf %0 : vector<64x128xf32> to vector<64x128xbf16>
    %cst = arith.constant dense<0.000000e+00> : vector<64x128xf32>
    %5 = tpu.matmul %4, %2, %cst {dimension_numbers = #tpu.dot_dimension_numbers<[1], [0], [0], [1], [0, 0, 1, 1], [], []>} : vector<64x128xbf16>, vector<128x128xbf16>, vector<64x128xf32> -> vector<64x128xf32>
    %6 = vector.broadcast %3 : vector<1x128xf32> to vector<64x128xf32>
    %7 = arith.addf %5, %6 : vector<64x128xf32>
    %cst_6 = arith.constant 0.000000e+00 : f32
    %8 = vector.broadcast %cst_6 : f32 to vector<64x128xf32>
    %9 = arith.maximumf %7, %8 : vector<64x128xf32>
    %c1 = arith.constant 1 : index
    %c0_7 = arith.constant 0 : index
    %c0_8 = arith.constant 0 : index
    %10 = vector.load %arg2[%c1, %c0_7, %c0_8] : memref<7x128x128xbf16, #tpu.memory_space<vmem>>, vector<1x128x128xbf16>
    %11 = vector.shape_cast %10 : vector<1x128x128xbf16> to vector<128x128xbf16>
    %c1_9 = arith.constant 1 : index
    %c0_10 = arith.constant 0 : index
    %12 = vector.load %arg3[%c1_9, %c0_10] : memref<8x128xf32, #tpu.memory_space<vmem>>, vector<1x128xf32>
    %13 = arith.truncf %9 : vector<64x128xf32> to vector<64x128xbf16>
    %cst_11 = arith.constant dense<0.000000e+00> : vector<64x128xf32>
    %14 = tpu.matmul %13, %11, %cst_11 {dimension_numbers = #tpu.dot_dimension_numbers<[1], [0], [0], [1], [0, 0, 1, 1], [], []>} : vector<64x128xbf16>, vector<128x128xbf16>, vector<64x128xf32> -> vector<64x128xf32>
    %15 = vector.broadcast %12 : vector<1x128xf32> to vector<64x128xf32>
    %16 = arith.addf %14, %15 : vector<64x128xf32>
    %cst_12 = arith.constant 0.000000e+00 : f32
    %17 = vector.broadcast %cst_12 : f32 to vector<64x128xf32>
    %18 = arith.maximumf %16, %17 : vector<64x128xf32>
    %c2 = arith.constant 2 : index
    %c0_13 = arith.constant 0 : index
    %c0_14 = arith.constant 0 : index
    %19 = vector.load %arg2[%c2, %c0_13, %c0_14] : memref<7x128x128xbf16, #tpu.memory_space<vmem>>, vector<1x128x128xbf16>
    %20 = vector.shape_cast %19 : vector<1x128x128xbf16> to vector<128x128xbf16>
    %c2_15 = arith.constant 2 : index
    %c0_16 = arith.constant 0 : index
    %21 = vector.load %arg3[%c2_15, %c0_16] : memref<8x128xf32, #tpu.memory_space<vmem>>, vector<1x128xf32>
    %22 = arith.truncf %18 : vector<64x128xf32> to vector<64x128xbf16>
    %cst_17 = arith.constant dense<0.000000e+00> : vector<64x128xf32>
    %23 = tpu.matmul %22, %20, %cst_17 {dimension_numbers = #tpu.dot_dimension_numbers<[1], [0], [0], [1], [0, 0, 1, 1], [], []>} : vector<64x128xbf16>, vector<128x128xbf16>, vector<64x128xf32> -> vector<64x128xf32>
    %24 = vector.broadcast %21 : vector<1x128xf32> to vector<64x128xf32>
    %25 = arith.addf %23, %24 : vector<64x128xf32>
    %cst_18 = arith.constant 0.000000e+00 : f32
    %26 = vector.broadcast %cst_18 : f32 to vector<64x128xf32>
    %27 = arith.maximumf %25, %26 : vector<64x128xf32>
    %c3 = arith.constant 3 : index
    %c0_19 = arith.constant 0 : index
    %c0_20 = arith.constant 0 : index
    %28 = vector.load %arg2[%c3, %c0_19, %c0_20] : memref<7x128x128xbf16, #tpu.memory_space<vmem>>, vector<1x128x128xbf16>
    %29 = vector.shape_cast %28 : vector<1x128x128xbf16> to vector<128x128xbf16>
    %c3_21 = arith.constant 3 : index
    %c0_22 = arith.constant 0 : index
    %30 = vector.load %arg3[%c3_21, %c0_22] : memref<8x128xf32, #tpu.memory_space<vmem>>, vector<1x128xf32>
    %31 = arith.truncf %27 : vector<64x128xf32> to vector<64x128xbf16>
    %cst_23 = arith.constant dense<0.000000e+00> : vector<64x128xf32>
    %32 = tpu.matmul %31, %29, %cst_23 {dimension_numbers = #tpu.dot_dimension_numbers<[1], [0], [0], [1], [0, 0, 1, 1], [], []>} : vector<64x128xbf16>, vector<128x128xbf16>, vector<64x128xf32> -> vector<64x128xf32>
    %33 = vector.broadcast %30 : vector<1x128xf32> to vector<64x128xf32>
    %34 = arith.addf %32, %33 : vector<64x128xf32>
    %cst_24 = arith.constant 0.000000e+00 : f32
    %35 = vector.broadcast %cst_24 : f32 to vector<64x128xf32>
    %36 = arith.maximumf %34, %35 : vector<64x128xf32>
    %c4 = arith.constant 4 : index
    %c0_25 = arith.constant 0 : index
    %c0_26 = arith.constant 0 : index
    %37 = vector.load %arg2[%c4, %c0_25, %c0_26] : memref<7x128x128xbf16, #tpu.memory_space<vmem>>, vector<1x128x128xbf16>
    %38 = vector.shape_cast %37 : vector<1x128x128xbf16> to vector<128x128xbf16>
    %c4_27 = arith.constant 4 : index
    %c0_28 = arith.constant 0 : index
    %39 = vector.load %arg3[%c4_27, %c0_28] : memref<8x128xf32, #tpu.memory_space<vmem>>, vector<1x128xf32>
    %40 = arith.truncf %36 : vector<64x128xf32> to vector<64x128xbf16>
    %cst_29 = arith.constant dense<0.000000e+00> : vector<64x128xf32>
    %41 = tpu.matmul %40, %38, %cst_29 {dimension_numbers = #tpu.dot_dimension_numbers<[1], [0], [0], [1], [0, 0, 1, 1], [], []>} : vector<64x128xbf16>, vector<128x128xbf16>, vector<64x128xf32> -> vector<64x128xf32>
    %42 = vector.broadcast %39 : vector<1x128xf32> to vector<64x128xf32>
    %43 = arith.addf %41, %42 : vector<64x128xf32>
    %cst_30 = arith.constant 0.000000e+00 : f32
    %44 = vector.broadcast %cst_30 : f32 to vector<64x128xf32>
    %45 = arith.maximumf %43, %44 : vector<64x128xf32>
    %c5 = arith.constant 5 : index
    %c0_31 = arith.constant 0 : index
    %c0_32 = arith.constant 0 : index
    %46 = vector.load %arg2[%c5, %c0_31, %c0_32] : memref<7x128x128xbf16, #tpu.memory_space<vmem>>, vector<1x128x128xbf16>
    %47 = vector.shape_cast %46 : vector<1x128x128xbf16> to vector<128x128xbf16>
    %c5_33 = arith.constant 5 : index
    %c0_34 = arith.constant 0 : index
    %48 = vector.load %arg3[%c5_33, %c0_34] : memref<8x128xf32, #tpu.memory_space<vmem>>, vector<1x128xf32>
    %49 = arith.truncf %45 : vector<64x128xf32> to vector<64x128xbf16>
    %cst_35 = arith.constant dense<0.000000e+00> : vector<64x128xf32>
    %50 = tpu.matmul %49, %47, %cst_35 {dimension_numbers = #tpu.dot_dimension_numbers<[1], [0], [0], [1], [0, 0, 1, 1], [], []>} : vector<64x128xbf16>, vector<128x128xbf16>, vector<64x128xf32> -> vector<64x128xf32>
    %51 = vector.broadcast %48 : vector<1x128xf32> to vector<64x128xf32>
    %52 = arith.addf %50, %51 : vector<64x128xf32>
    %cst_36 = arith.constant 0.000000e+00 : f32
    %53 = vector.broadcast %cst_36 : f32 to vector<64x128xf32>
    %54 = arith.maximumf %52, %53 : vector<64x128xf32>
    %c6 = arith.constant 6 : index
    %c0_37 = arith.constant 0 : index
    %c0_38 = arith.constant 0 : index
    %55 = vector.load %arg2[%c6, %c0_37, %c0_38] : memref<7x128x128xbf16, #tpu.memory_space<vmem>>, vector<1x128x128xbf16>
    %56 = vector.shape_cast %55 : vector<1x128x128xbf16> to vector<128x128xbf16>
    %c6_39 = arith.constant 6 : index
    %c0_40 = arith.constant 0 : index
    %57 = vector.load %arg3[%c6_39, %c0_40] : memref<8x128xf32, #tpu.memory_space<vmem>>, vector<1x128xf32>
    %58 = arith.truncf %54 : vector<64x128xf32> to vector<64x128xbf16>
    %cst_41 = arith.constant dense<0.000000e+00> : vector<64x128xf32>
    %59 = tpu.matmul %58, %56, %cst_41 {dimension_numbers = #tpu.dot_dimension_numbers<[1], [0], [0], [1], [0, 0, 1, 1], [], []>} : vector<64x128xbf16>, vector<128x128xbf16>, vector<64x128xf32> -> vector<64x128xf32>
    %60 = vector.broadcast %57 : vector<1x128xf32> to vector<64x128xf32>
    %61 = arith.addf %59, %60 : vector<64x128xf32>
    %c0_42 = arith.constant 0 : index
    %c0_43 = arith.constant 0 : index
    %62 = vector.load %arg4[%c0_42, %c0_43] : memref<64x128xf32, #tpu.memory_space<vmem>>, vector<64x128xf32>
    tpu.vector_store %arg4[%c0_42, %c0_43], %61 {strides = array<i32>} : memref<64x128xf32, #tpu.memory_space<vmem>>, vector<64x128xf32>,
    return
  }
  func.func @transform_0(%arg0: i32) -> (i32, i32) {
    %c0_i32 = arith.constant 0 : i32
    %c0_i32_0 = arith.constant 0 : i32
    return %arg0, %c0_i32 : i32, i32
  }
  func.func @transform_1(%arg0: i32) -> (i32, i32, i32) {
    %c0_i32 = arith.constant 0 : i32
    %c0_i32_0 = arith.constant 0 : i32
    %c0_i32_1 = arith.constant 0 : i32
    %c0_i32_2 = arith.constant 0 : i32
    return %c0_i32, %c0_i32_0, %c0_i32_1 : i32, i32, i32
  }
  func.func @transform_2(%arg0: i32) -> (i32, i32) {
    %c0_i32 = arith.constant 0 : i32
    %c0_i32_0 = arith.constant 0 : i32
    %c0_i32_1 = arith.constant 0 : i32
    return %c0_i32, %c0_i32_0 : i32, i32
  }
  func.func @transform_3(%arg0: i32) -> (i32, i32) {
    %c0_i32 = arith.constant 0 : i32
    %c0_i32_0 = arith.constant 0 : i32
    return %arg0, %c0_i32 : i32, i32
  }
}

</mosaic_0001>

<bundles_post_ra>
// kernel: _forward_impl.1
= control target key start
LH: loop header
LB: loop body
LE: loop exit
PB: predicated region body
PF: predicated region fallthrough
CT: control target
= control target key end

     0   :  { %8 = vsyncpa [#allocation3], 0  ;;  %s1138_s15 = smov [#allocation2]   ;;  %s1139_s17 = smov 64   ;;  %s1233_s0 = inlined_call_operand.vmem [shape: f32[64,128], index: 0, kind: input, shape index: {}]   ;;  %s1234_s1 = inlined_call_operand.hbm [shape: bf16[7,128,128], index: 1, kind: input, shape index: {}]   ;;  %s1235_s2 = inlined_call_operand.vmem [shape: f32[8,128], index: 2, kind: input, shape index: {}]   ;;  %s1236_s3 = inlined_call_operand.vmem [shape: f32[64,128], index: 3, kind: output, shape index: {}]  }
   0x1   :  { %s15_s14 = sshll.u32 %s1234_s1, 4  ;;  %s17_s16 = sshll.u32 %s1138_s15, 4  ;;  %s16_s14 = int_to_ptr.hbm [resolvable:$true] %s15_s14  ;;  %s18_s16 = int_to_ptr.vmem [resolvable:$true] %s17_s16 }
   0x2   :  { %s1140_s18 = smov 4  }
   0x3   :  { %23 = dma.hbm_to_vmem [thread:$0]  %s16_s14, 7168, %s18_s16, [#allocation3], %s1139_s17, %s1139_s17, %s1140_s18  }
   0x4   :  { %1136 = dma.done.wait [#allocation3], 7168  }
   0x5   :  { %1137 = vsyncadd [#allocation3], 4294960128  ;;  %v1029_v0 = vld [vmem:[#allocation2 + $0x38] sm:$0xff]  ;;  %v1028_v1 = vld [vmem:[#allocation2 + $0x30] sm:$0xff] }
   0x6   :  { %108 = vmatpush.bf16.msra.mxu0 %v1029_v0  ;;  %1078 = vmatpush.bf16.msra.mxu3 %v1029_v0  ;;  %v1027_v2 = vld [vmem:[#allocation2 + $0x28] sm:$0xff]  ;;  %v1026_v3 = vld [vmem:[#allocation2 + $0x20] sm:$0xff]  ;;  %v1025_v4 = vld [vmem:[#allocation2 + $0x18] sm:$0xff] }
   0x7   :  { %v1037_v5 = vld [vmem:[#allocation2 + $0x78] sm:$0xff]  ;;  %v1024_v6 = vld [vmem:[#allocation2 + $0x10] sm:$0xff]  ;;  %v1023_v8 = vld [vmem:[#allocation2 + $0x8] sm:$0xff] }
   0x8   :  { %216 = vmatpush.bf16.msra.mxu1 %v1037_v5  ;;  %v1036_v7 = vld [vmem:[#allocation2 + $0x70] sm:$0xff]  ;;  %v1035_v9 = vld [vmem:[#allocation2 + $0x68] sm:$0xff]  ;;  %v1022_v10 = vld [vmem:[#allocation2] sm:$0xff] }
   0x9   :  { %v30_v11 = vld [vmem:[%s1233_s0] sm:$0xff]  ;;  %v31_v12 = vld [vmem:[%s1233_s0 + $0x8] sm:$0xff]  ;;  %v32_v18 = vld [vmem:[%s1233_s0 + $0x10] sm:$0xff] }
   0xa   :  { %109 = vmatpush.bf16.msra.mxu0 %v1028_v1  ;;  %1079 = vmatpush.bf16.msra.mxu3 %v1028_v1  ;;  %v34_v13 = vld [vmem:[%s1233_s0 + $0x20] sm:$0xff]  ;;  %v35_v14 = vld [vmem:[%s1233_s0 + $0x28] sm:$0xff]  ;;  %v55_v16 = vpack.c.bf16 %v31_v12, %v30_v11  ;;  %v33_v19 = vld [vmem:[%s1233_s0 + $0x18] sm:$0xff] }
   0xb   :  { %v1034_v15 = vld [vmem:[#allocation2 + $0x60] sm:$0xff]  ;;  %v57_v17 = vpack.c.bf16 %v35_v14, %v34_v13  ;;  %v36_v20 = vld [vmem:[%s1233_s0 + $0x30] sm:$0xff]  ;;  %v37_v21 = vld [vmem:[%s1233_s0 + $0x38] sm:$0xff]  ;;  %v56_v22 = vpack.c.bf16 %v33_v19, %v32_v18 }
   0xc   :  { %217 = vmatpush.bf16.msra.mxu1 %v1036_v7  ;;  %v58_v23 = vpack.c.bf16 %v37_v21, %v36_v20  ;;  %v1033_v24 = vld [vmem:[#allocation2 + $0x58] sm:$0xff]  ;;  %v1032_v25 = vld [vmem:[#allocation2 + $0x50] sm:$0xff]  ;;  %v1031_v26 = vld [vmem:[#allocation2 + $0x48] sm:$0xff] }
   0xd   :  { %v1030_v27 = vld [vmem:[#allocation2 + $0x40] sm:$0xff]  ;;  %v1045_v45 = vld [vmem:[#allocation2 + $0xb8] sm:$0xff]  ;;  %v1044_v46 = vld [vmem:[#allocation2 + $0xb0] sm:$0xff] }
   0xe   :  { %110 = vmatpush.bf16.msra.mxu0 %v1027_v2  ;;  %1080 = vmatpush.bf16.msra.mxu3 %v1027_v2  ;;  %v1105_v29 = vld [vmem:[%s1235_s2] ss:$0 sm:$0xff]  ;;  %v1043_v49 = vld [vmem:[#allocation2 + $0xa8] sm:$0xff]  ;;  %v1041_v61 = vld [vmem:[#allocation2 + $0x98] sm:$0xff] }
   0xf   :  { %324 = vmatpush.bf16.msra.mxu2 %v1045_v45  ;;  %v1042_v53 = vld [vmem:[#allocation2 + $0xa0] sm:$0xff]  ;;  %v1040_v62 = vld [vmem:[#allocation2 + $0x90] sm:$0xff]  ;;  %v1039_v63 = vld [vmem:[#allocation2 + $0x88] sm:$0xff] }
  0x10   :  { %218 = vmatpush.bf16.msra.mxu1 %v1035_v9  ;;  %v1038_v0 = vld [vmem:[#allocation2 + $0x80] sm:$0xff]  ;;  %v1052_v18 = vld [vmem:[#allocation2 + $0xf0] sm:$0xff]  ;;  %v1051_v19 = vld [vmem:[#allocation2 + $0xe8] sm:$0xff] }
  0x11   :  { %v1106_v2 = vld [vmem:[%s1235_s2 + $0x1] ss:$0 sm:$0xff] }
  0x12   :  { %111 = vmatpush.bf16.msra.mxu0 %v1026_v3  ;;  %1081 = vmatpush.bf16.msra.mxu3 %v1026_v3 }
  0x13   :  { %325 = vmatpush.bf16.msra.mxu2 %v1044_v46 }
  0x14   :  { %219 = vmatpush.bf16.msra.mxu1 %v1034_v15 }
  0x16   :  { %112 = vmatpush.bf16.msra.mxu0 %v1025_v4  ;;  %1082 = vmatpush.bf16.msra.mxu3 %v1025_v4 }
  0x17   :  { %326 = vmatpush.bf16.msra.mxu2 %v1043_v49 }
  0x18   :  { %220 = vmatpush.bf16.msra.mxu1 %v1033_v24 }
  0x1a   :  { %113 = vmatpush.bf16.msra.mxu0 %v1024_v6  ;;  %1083 = vmatpush.bf16.msra.mxu3 %v1024_v6 }
  0x1b   :  { %327 = vmatpush.bf16.msra.mxu2 %v1042_v53  ;;  %v1061_v53 = vld [vmem:[#allocation2 + $0x138] sm:$0xff] }
  0x1c   :  { %221 = vmatpush.bf16.msra.mxu1 %v1032_v25 }
  0x1e   :  { %114 = vmatpush.bf16.msra.mxu0 %v1023_v8  ;;  %1084 = vmatpush.bf16.msra.mxu3 %v1023_v8 }
  0x1f   :  { %328 = vmatpush.bf16.msra.mxu2 %v1041_v61 }
  0x20   :  { %222 = vmatpush.bf16.msra.mxu1 %v1031_v26 }
  0x22   :  { %115 = vmatpush.bf16.msra.mxu0 %v1022_v10  ;;  %1085 = vmatpush.bf16.msra.mxu3 %v1022_v10 }
  0x23   :  { %329 = vmatpush.bf16.msra.mxu2 %v1040_v62 }
  0x24   :  { %223 = vmatpush.bf16.msra.mxu1 %v1030_v27  ;;  %v1049_v27 = vld [vmem:[#allocation2 + $0xd8] sm:$0xff] }
  0x25   :  { %116 = vmatmul.bf16.vlgmr.msra.gmra.mxu0 %v55_v16  ;;  %126 = vmatmul.bf16.vlgmr.msra.gmra.mxu3 %v57_v17  ;;  %v1053_v16 = vld [vmem:[#allocation2 + $0xf8] sm:$0xff] }
  0x26   :  { %432 = vmatpush.bf16.msrb.mxu3 %v1053_v16  ;;  %540 = vmatpush.bf16.msrb.mxu0 %v1061_v53 }
  0x27   :  { %330 = vmatpush.bf16.msra.mxu2 %v1039_v63 }
  0x2a   :  { %433 = vmatpush.bf16.msrb.mxu3 %v1052_v18 }
  0x2b   :  { %331 = vmatpush.bf16.msra.mxu2 %v1038_v0  ;;  %v1057_v0 = vld [vmem:[#allocation2 + $0x118] sm:$0xff] }
  0x2e   :  { %434 = vmatpush.bf16.msrb.mxu3 %v1051_v19 }
  0x35   :  { %121 = vmatmul.bf16.gmra.mxu0 %v56_v22  ;;  %131 = vmatmul.bf16.gmra.mxu3 %v58_v23  ;;  %v1050_v23 = vld [vmem:[#allocation2 + $0xe0] sm:$0xff] }
  0x36   :  { %435 = vmatpush.bf16.msrb.mxu3 %v1050_v23 }
  0x3a   :  { %436 = vmatpush.bf16.msrb.mxu3 %v1049_v27 }
  0xa2   :  { %v117_v28 = vpop.f32.mrf.mxu0 }
  0xa3   :  { %v118_v30 = vadd.f32 %v1105_v29, %v117_v28 }
  0xa5   :  { %v137_v33 = vmax.f32 %v118_v30, 0.0 }
  0xa8   :  { %v127_v37 = vpop.f32.mrf.mxu3 }
  0xa9   :  { %v128_v47 = vadd.f32 %v1105_v29, %v127_v37  ;;  %v1046_v37 = vld [vmem:[#allocation2 + $0xc0] sm:$0xff] }
  0xaa   :  { %v119_v31 = vpop.f32.mrf.mxu0 }
  0xab   :  { %v120_v32 = vadd.f32 %v1105_v29, %v119_v31  ;;  %v141_v51 = vmax.f32 %v128_v47, 0.0 }
  0xad   :  { %v138_v34 = vmax.f32 %v120_v32, 0.0 }
  0xaf   :  { %v163_v35 = vpack.c.bf16 %v138_v34, %v137_v33 }
  0xb0   :  { %v129_v44 = vpop.f32.mrf.mxu3 }
  0xb1   :  { %224 = vmatmul.bf16.vlgmr.msra.gmra.mxu1 %v163_v35  ;;  %v130_v48 = vadd.f32 %v1105_v29, %v129_v44  ;;  %v1048_v35 = vld [vmem:[#allocation2 + $0xd0] sm:$0xff] }
  0xb2   :  { %v122_v36 = vpop.f32.mrf.mxu0  ;;  %437 = vmatpush.bf16.msrb.mxu3 %v1048_v35 }
  0xb3   :  { %v123_v38 = vadd.f32 %v1105_v29, %v122_v36  ;;  %v142_v52 = vmax.f32 %v130_v48, 0.0  ;;  %v1047_v36 = vld [vmem:[#allocation2 + $0xc8] sm:$0xff] }
  0xb5   :  { %v139_v41 = vmax.f32 %v123_v38, 0.0  ;;  %v165_v54 = vpack.c.bf16 %v142_v52, %v141_v51 }
  0xb6   :  { %438 = vmatpush.bf16.msrb.mxu3 %v1047_v36 }
  0xb8   :  { %v132_v50 = vpop.f32.mrf.mxu3 }
  0xb9   :  { %v133_v56 = vadd.f32 %v1105_v29, %v132_v50 }
  0xba   :  { %v124_v39 = vpop.f32.mrf.mxu0  ;;  %439 = vmatpush.bf16.msrb.mxu3 %v1046_v37  ;;  %v1065_v37 = vld [vmem:[#allocation2 + $0x158] sm:$0xff] }
  0xbb   :  { %v125_v40 = vadd.f32 %v1105_v29, %v124_v39  ;;  %v143_v58 = vmax.f32 %v133_v56, 0.0  ;;  %v1107_v39 = vld [vmem:[%s1235_s2 + $0x2] ss:$0 sm:$0xff]  ;;  %v1059_v56 = vld [vmem:[#allocation2 + $0x128] sm:$0xff] }
  0xbd   :  { %v140_v42 = vmax.f32 %v125_v40, 0.0 }
  0xbf   :  { %v164_v43 = vpack.c.bf16 %v140_v42, %v139_v41 }
  0xc0   :  { %v134_v55 = vpop.f32.mrf.mxu3 }
  0xc1   :  { %229 = vmatmul.bf16.gmra.mxu1 %v164_v43  ;;  %v135_v57 = vadd.f32 %v1105_v29, %v134_v55  ;;  %v1060_v55 = vld [vmem:[#allocation2 + $0x130] sm:$0xff] }
  0xc2   :  { %541 = vmatpush.bf16.msrb.mxu0 %v1060_v55 }
  0xc3   :  { %v144_v59 = vmax.f32 %v135_v57, 0.0 }
  0xc5   :  { %v166_v60 = vpack.c.bf16 %v144_v59, %v143_v58 }
  0xc6   :  { %542 = vmatpush.bf16.msrb.mxu0 %v1059_v56 }
  0xd1   :  { %234 = vmatmul.bf16.gmra.mxu1 %v165_v54 }
  0xe1   :  { %239 = vmatmul.bf16.gmra.mxu1 %v166_v60  ;;  %v1058_v60 = vld [vmem:[#allocation2 + $0x120] sm:$0xff] }
  0xe2   :  { %543 = vmatpush.bf16.msrb.mxu0 %v1058_v60 }
  0xe6   :  { %544 = vmatpush.bf16.msrb.mxu0 %v1057_v0 }
 0x12e   :  { %v225_v1 = vpop.f32.mrf.mxu1 }
 0x12f   :  { %v226_v3 = vadd.f32 %v1106_v2, %v225_v1 }
 0x131   :  { %v245_v6 = vmax.f32 %v226_v3, 0.0 }
 0x136   :  { %v227_v4 = vpop.f32.mrf.mxu1 }
 0x137   :  { %v228_v5 = vadd.f32 %v1106_v2, %v227_v4 }
 0x139   :  { %v246_v7 = vmax.f32 %v228_v5, 0.0 }
 0x13b   :  { %v271_v8 = vpack.c.bf16 %v246_v7, %v245_v6 }
 0x13d   :  { %332 = vmatmul.bf16.vlgmr.msra.gmra.mxu2 %v271_v8  ;;  %v1056_v8 = vld [vmem:[#allocation2 + $0x110] sm:$0xff] }
 0x13e   :  { %v230_v9 = vpop.f32.mrf.mxu1  ;;  %545 = vmatpush.bf16.msrb.mxu0 %v1056_v8 }
 0x13f   :  { %v231_v10 = vadd.f32 %v1106_v2, %v230_v9  ;;  %v1055_v9 = vld [vmem:[#allocation2 + $0x108] sm:$0xff] }
 0x141   :  { %v247_v13 = vmax.f32 %v231_v10, 0.0  ;;  %v1054_v10 = vld [vmem:[#allocation2 + $0x100] sm:$0xff] }
 0x142   :  { %546 = vmatpush.bf16.msrb.mxu0 %v1055_v9 }
 0x146   :  { %v232_v11 = vpop.f32.mrf.mxu1  ;;  %547 = vmatpush.bf16.msrb.mxu0 %v1054_v10  ;;  %v1073_v10 = vld [vmem:[#allocation2 + $0x198] sm:$0xff] }
 0x147   :  { %v233_v12 = vadd.f32 %v1106_v2, %v232_v11 }
 0x149   :  { %v248_v14 = vmax.f32 %v233_v12, 0.0  ;;  %v1108_v12 = vld [vmem:[%s1235_s2 + $0x3] ss:$0 sm:$0xff] }
 0x14b   :  { %v272_v15 = vpack.c.bf16 %v248_v14, %v247_v13 }
 0x14d   :  { %337 = vmatmul.bf16.gmra.mxu2 %v272_v15 }
 0x14e   :  { %v235_v17 = vpop.f32.mrf.mxu1 }
 0x14f   :  { %v236_v20 = vadd.f32 %v1106_v2, %v235_v17 }
 0x151   :  { %v249_v24 = vmax.f32 %v236_v20, 0.0 }
 0x156   :  { %v237_v21 = vpop.f32.mrf.mxu1 }
 0x157   :  { %v238_v22 = vadd.f32 %v1106_v2, %v237_v21 }
 0x159   :  { %v250_v25 = vmax.f32 %v238_v22, 0.0 }
 0x15b   :  { %v273_v26 = vpack.c.bf16 %v250_v25, %v249_v24 }
 0x15d   :  { %342 = vmatmul.bf16.gmra.mxu2 %v273_v26  ;;  %v1069_v26 = vld [vmem:[#allocation2 + $0x178] sm:$0xff] }
 0x15e   :  { %v240_v28 = vpop.f32.mrf.mxu1  ;;  %648 = vmatpush.bf16.msra.mxu0 %v1069_v26  ;;  %1086 = vmatpush.bf16.msrb.mxu1 %v1069_v26 }
 0x15f   :  { %v241_v29 = vadd.f32 %v1106_v2, %v240_v28  ;;  %v1068_v28 = vld [vmem:[#allocation2 + $0x170] sm:$0xff] }
 0x161   :  { %v251_v32 = vmax.f32 %v241_v29, 0.0  ;;  %v1067_v29 = vld [vmem:[#allocation2 + $0x168] sm:$0xff] }
 0x162   :  { %649 = vmatpush.bf16.msra.mxu0 %v1068_v28  ;;  %1087 = vmatpush.bf16.msrb.mxu1 %v1068_v28 }
 0x166   :  { %v242_v30 = vpop.f32.mrf.mxu1  ;;  %650 = vmatpush.bf16.msra.mxu0 %v1067_v29  ;;  %1088 = vmatpush.bf16.msrb.mxu1 %v1067_v29 }
 0x167   :  { %v243_v31 = vadd.f32 %v1106_v2, %v242_v30 }
 0x169   :  { %v252_v33 = vmax.f32 %v243_v31, 0.0 }
 0x16b   :  { %v274_v34 = vpack.c.bf16 %v252_v33, %v251_v32  ;;  %v1066_v33 = vld [vmem:[#allocation2 + $0x160] sm:$0xff] }
 0x16c   :  { %651 = vmatpush.bf16.msra.mxu0 %v1066_v33  ;;  %1089 = vmatpush.bf16.msrb.mxu1 %v1066_v33 }
 0x16d   :  { %347 = vmatmul.bf16.gmra.mxu2 %v274_v34 }
 0x170   :  { %652 = vmatpush.bf16.msra.mxu0 %v1065_v37  ;;  %1090 = vmatpush.bf16.msrb.mxu1 %v1065_v37 }
 0x1c0   :  { %v333_v38 = vpop.f32.mrf.mxu2 }
 0x1c1   :  { %v334_v40 = vadd.f32 %v1107_v39, %v333_v38 }
 0x1c3   :  { %v353_v43 = vmax.f32 %v334_v40, 0.0 }
 0x1c8   :  { %v335_v41 = vpop.f32.mrf.mxu2 }
 0x1c9   :  { %v336_v42 = vadd.f32 %v1107_v39, %v335_v41 }
 0x1cb   :  { %v354_v44 = vmax.f32 %v336_v42, 0.0 }
 0x1cd   :  { %v379_v45 = vpack.c.bf16 %v354_v44, %v353_v43 }
 0x1cf   :  { %440 = vmatmul.bf16.vlgmr.msrb.gmra.mxu3 %v379_v45  ;;  %v1064_v45 = vld [vmem:[#allocation2 + $0x150] sm:$0xff] }
 0x1d0   :  { %v338_v46 = vpop.f32.mrf.mxu2  ;;  %653 = vmatpush.bf16.msra.mxu0 %v1064_v45  ;;  %1091 = vmatpush.bf16.msrb.mxu1 %v1064_v45 }
 0x1d1   :  { %v339_v47 = vadd.f32 %v1107_v39, %v338_v46  ;;  %v1063_v46 = vld [vmem:[#allocation2 + $0x148] sm:$0xff] }
 0x1d3   :  { %v355_v50 = vmax.f32 %v339_v47, 0.0  ;;  %v1062_v47 = vld [vmem:[#allocation2 + $0x140] sm:$0xff] }
 0x1d4   :  { %654 = vmatpush.bf16.msra.mxu0 %v1063_v46  ;;  %1092 = vmatpush.bf16.msrb.mxu1 %v1063_v46 }
 0x1d8   :  { %v340_v48 = vpop.f32.mrf.mxu2  ;;  %655 = vmatpush.bf16.msra.mxu0 %v1062_v47  ;;  %1093 = vmatpush.bf16.msrb.mxu1 %v1062_v47 }
 0x1d9   :  { %v341_v49 = vadd.f32 %v1107_v39, %v340_v48 }
 0x1db   :  { %v356_v51 = vmax.f32 %v341_v49, 0.0  ;;  %v1109_v49 = vld [vmem:[%s1235_s2 + $0x4] ss:$0 sm:$0xff] }
 0x1dd   :  { %v380_v52 = vpack.c.bf16 %v356_v51, %v355_v50 }
 0x1df   :  { %445 = vmatmul.bf16.gmra.mxu3 %v380_v52 }
 0x1e0   :  { %v343_v54 = vpop.f32.mrf.mxu2 }
 0x1e1   :  { %v344_v57 = vadd.f32 %v1107_v39, %v343_v54 }
 0x1e3   :  { %v357_v61 = vmax.f32 %v344_v57, 0.0 }
 0x1e8   :  { %v345_v58 = vpop.f32.mrf.mxu2 }
 0x1e9   :  { %v346_v59 = vadd.f32 %v1107_v39, %v345_v58 }
 0x1eb   :  { %v358_v62 = vmax.f32 %v346_v59, 0.0 }
 0x1ed   :  { %v381_v63 = vpack.c.bf16 %v358_v62, %v357_v61 }
 0x1ef   :  { %450 = vmatmul.bf16.gmra.mxu3 %v381_v63  ;;  %v1077_v63 = vld [vmem:[#allocation2 + $0x1b8] sm:$0xff] }
 0x1f0   :  { %v348_v1 = vpop.f32.mrf.mxu2  ;;  %756 = vmatpush.bf16.msrb.mxu2 %v1077_v63  ;;  %1094 = vmatpush.bf16.msra.mxu3 %v1077_v63 }
 0x1f1   :  { %v349_v2 = vadd.f32 %v1107_v39, %v348_v1  ;;  %v1076_v1 = vld [vmem:[#allocation2 + $0x1b0] sm:$0xff] }
 0x1f3   :  { %v359_v5 = vmax.f32 %v349_v2, 0.0  ;;  %v1075_v2 = vld [vmem:[#allocation2 + $0x1a8] sm:$0xff] }
 0x1f4   :  { %757 = vmatpush.bf16.msrb.mxu2 %v1076_v1  ;;  %1095 = vmatpush.bf16.msra.mxu3 %v1076_v1 }
 0x1f8   :  { %v350_v3 = vpop.f32.mrf.mxu2  ;;  %758 = vmatpush.bf16.msrb.mxu2 %v1075_v2  ;;  %1096 = vmatpush.bf16.msra.mxu3 %v1075_v2 }
 0x1f9   :  { %v351_v4 = vadd.f32 %v1107_v39, %v350_v3 }
 0x1fb   :  { %v360_v6 = vmax.f32 %v351_v4, 0.0 }
 0x1fd   :  { %v382_v7 = vpack.c.bf16 %v360_v6, %v359_v5  ;;  %v1074_v6 = vld [vmem:[#allocation2 + $0x1a0] sm:$0xff] }
 0x1fe   :  { %759 = vmatpush.bf16.msrb.mxu2 %v1074_v6  ;;  %1097 = vmatpush.bf16.msra.mxu3 %v1074_v6 }
 0x1ff   :  { %455 = vmatmul.bf16.gmra.mxu3 %v382_v7 }
 0x202   :  { %760 = vmatpush.bf16.msrb.mxu2 %v1073_v10  ;;  %1098 = vmatpush.bf16.msra.mxu3 %v1073_v10 }
 0x252   :  { %v441_v11 = vpop.f32.mrf.mxu3 }
 0x253   :  { %v442_v13 = vadd.f32 %v1108_v12, %v441_v11 }
 0x255   :  { %v461_v16 = vmax.f32 %v442_v13, 0.0 }
 0x25a   :  { %v443_v14 = vpop.f32.mrf.mxu3 }
 0x25b   :  { %v444_v15 = vadd.f32 %v1108_v12, %v443_v14 }
 0x25d   :  { %v462_v17 = vmax.f32 %v444_v15, 0.0 }
 0x25f   :  { %v487_v18 = vpack.c.bf16 %v462_v17, %v461_v16 }
 0x261   :  { %548 = vmatmul.bf16.vlgmr.msrb.gmra.mxu0 %v487_v18  ;;  %v1072_v18 = vld [vmem:[#allocation2 + $0x190] sm:$0xff] }
 0x262   :  { %v446_v19 = vpop.f32.mrf.mxu3  ;;  %761 = vmatpush.bf16.msrb.mxu2 %v1072_v18  ;;  %1099 = vmatpush.bf16.msra.mxu3 %v1072_v18 }
 0x263   :  { %v447_v20 = vadd.f32 %v1108_v12, %v446_v19  ;;  %v1071_v19 = vld [vmem:[#allocation2 + $0x188] sm:$0xff] }
 0x265   :  { %v463_v23 = vmax.f32 %v447_v20, 0.0  ;;  %v1070_v20 = vld [vmem:[#allocation2 + $0x180] sm:$0xff] }
 0x266   :  { %762 = vmatpush.bf16.msrb.mxu2 %v1071_v19  ;;  %1100 = vmatpush.bf16.msra.mxu3 %v1071_v19 }
 0x26a   :  { %v448_v21 = vpop.f32.mrf.mxu3  ;;  %763 = vmatpush.bf16.msrb.mxu2 %v1070_v20  ;;  %1101 = vmatpush.bf16.msra.mxu3 %v1070_v20 }
 0x26b   :  { %v449_v22 = vadd.f32 %v1108_v12, %v448_v21 }
 0x26d   :  { %v464_v24 = vmax.f32 %v449_v22, 0.0  ;;  %v1110_v22 = vld [vmem:[%s1235_s2 + $0x5] ss:$0 sm:$0xff] }
 0x26f   :  { %v488_v25 = vpack.c.bf16 %v464_v24, %v463_v23 }
 0x271   :  { %553 = vmatmul.bf16.gmra.mxu0 %v488_v25 }
 0x272   :  { %v451_v27 = vpop.f32.mrf.mxu3 }
 0x273   :  { %v452_v30 = vadd.f32 %v1108_v12, %v451_v27 }
 0x275   :  { %v465_v34 = vmax.f32 %v452_v30, 0.0 }
 0x27a   :  { %v453_v31 = vpop.f32.mrf.mxu3 }
 0x27b   :  { %v454_v32 = vadd.f32 %v1108_v12, %v453_v31 }
 0x27d   :  { %v466_v35 = vmax.f32 %v454_v32, 0.0 }
 0x27f   :  { %v489_v36 = vpack.c.bf16 %v466_v35, %v465_v34 }
 0x281   :  { %558 = vmatmul.bf16.gmra.mxu0 %v489_v36 }
 0x282   :  { %v456_v38 = vpop.f32.mrf.mxu3 }
 0x283   :  { %v457_v39 = vadd.f32 %v1108_v12, %v456_v38 }
 0x285   :  { %v467_v42 = vmax.f32 %v457_v39, 0.0 }
 0x28a   :  { %v458_v40 = vpop.f32.mrf.mxu3 }
 0x28b   :  { %v459_v41 = vadd.f32 %v1108_v12, %v458_v40 }
 0x28d   :  { %v468_v43 = vmax.f32 %v459_v41, 0.0 }
 0x28f   :  { %v490_v44 = vpack.c.bf16 %v468_v43, %v467_v42 }
 0x291   :  { %563 = vmatmul.bf16.gmra.mxu0 %v490_v44 }
 0x2de   :  { %v549_v48 = vpop.f32.mrf.mxu0 }
 0x2df   :  { %v550_v50 = vadd.f32 %v1109_v49, %v549_v48 }
 0x2e1   :  { %v569_v53 = vmax.f32 %v550_v50, 0.0  ;;  %v1111_v50 = vld [vmem:[%s1235_s2 + $0x6] ss:$0 sm:$0xff] }
 0x2e6   :  { %v551_v51 = vpop.f32.mrf.mxu0 }
 0x2e7   :  { %v552_v52 = vadd.f32 %v1109_v49, %v551_v51 }
 0x2e9   :  { %v570_v54 = vmax.f32 %v552_v52, 0.0 }
 0x2eb   :  { %v595_v55 = vpack.c.bf16 %v570_v54, %v569_v53 }
 0x2ed   :  { %656 = vmatmul.bf16.vlgmr.msra.gmra.mxu0 %v595_v55 }
 0x2ee   :  { %v554_v56 = vpop.f32.mrf.mxu0 }
 0x2ef   :  { %v555_v57 = vadd.f32 %v1109_v49, %v554_v56 }
 0x2f1   :  { %v571_v60 = vmax.f32 %v555_v57, 0.0 }
 0x2f6   :  { %v556_v58 = vpop.f32.mrf.mxu0 }
 0x2f7   :  { %v557_v59 = vadd.f32 %v1109_v49, %v556_v58 }
 0x2f9   :  { %v572_v61 = vmax.f32 %v557_v59, 0.0 }
 0x2fb   :  { %v596_v62 = vpack.c.bf16 %v572_v61, %v571_v60 }
 0x2fd   :  { %661 = vmatmul.bf16.vlgmr.msrb.gmra.mxu1 %v596_v62 }
 0x2fe   :  { %v559_v0 = vpop.f32.mrf.mxu0 }
 0x2ff   :  { %v560_v3 = vadd.f32 %v1109_v49, %v559_v0 }
 0x301   :  { %v573_v7 = vmax.f32 %v560_v3, 0.0 }
 0x306   :  { %v561_v4 = vpop.f32.mrf.mxu0 }
 0x307   :  { %v562_v5 = vadd.f32 %v1109_v49, %v561_v4 }
 0x309   :  { %v574_v8 = vmax.f32 %v562_v5, 0.0 }
 0x30b   :  { %v597_v9 = vpack.c.bf16 %v574_v8, %v573_v7 }
 0x30d   :  { %666 = vmatmul.bf16.gmra.mxu1 %v597_v9 }
 0x30e   :  { %v564_v11 = vpop.f32.mrf.mxu0 }
 0x30f   :  { %v565_v12 = vadd.f32 %v1109_v49, %v564_v11 }
 0x311   :  { %v575_v15 = vmax.f32 %v565_v12, 0.0 }
 0x316   :  { %v566_v13 = vpop.f32.mrf.mxu0 }
 0x317   :  { %v567_v14 = vadd.f32 %v1109_v49, %v566_v13 }
 0x319   :  { %v576_v16 = vmax.f32 %v567_v14, 0.0 }
 0x31b   :  { %v598_v17 = vpack.c.bf16 %v576_v16, %v575_v15 }
 0x31d   :  { %671 = vmatmul.bf16.gmra.mxu1 %v598_v17 }
 0x36a   :  { %v657_v21 = vpop.f32.mrf.mxu0 }
 0x36b   :  { %v658_v23 = vadd.f32 %v1110_v22, %v657_v21 }
 0x36d   :  { %v677_v26 = vmax.f32 %v658_v23, 0.0 }
 0x372   :  { %v659_v24 = vpop.f32.mrf.mxu0 }
 0x373   :  { %v660_v25 = vadd.f32 %v1110_v22, %v659_v24 }
 0x375   :  { %v678_v27 = vmax.f32 %v660_v25, 0.0 }
 0x377   :  { %v703_v28 = vpack.c.bf16 %v678_v27, %v677_v26 }
 0x379   :  { %764 = vmatmul.bf16.vlgmr.msrb.gmra.mxu2 %v703_v28 }
 0x37a   :  { %v662_v29 = vpop.f32.mrf.mxu1 }
 0x37b   :  { %v663_v30 = vadd.f32 %v1110_v22, %v662_v29 }
 0x37d   :  { %v679_v33 = vmax.f32 %v663_v30, 0.0 }
 0x382   :  { %v664_v31 = vpop.f32.mrf.mxu1 }
 0x383   :  { %v665_v32 = vadd.f32 %v1110_v22, %v664_v31 }
 0x385   :  { %v680_v34 = vmax.f32 %v665_v32, 0.0 }
 0x387   :  { %v704_v35 = vpack.c.bf16 %v680_v34, %v679_v33 }
 0x389   :  { %769 = vmatmul.bf16.gmra.mxu2 %v704_v35 }
 0x38a   :  { %v667_v36 = vpop.f32.mrf.mxu1 }
 0x38b   :  { %v668_v37 = vadd.f32 %v1110_v22, %v667_v36 }
 0x38d   :  { %v681_v40 = vmax.f32 %v668_v37, 0.0 }
 0x392   :  { %v669_v38 = vpop.f32.mrf.mxu1 }
 0x393   :  { %v670_v39 = vadd.f32 %v1110_v22, %v669_v38 }
 0x395   :  { %v682_v41 = vmax.f32 %v670_v39, 0.0 }
 0x397   :  { %v705_v42 = vpack.c.bf16 %v682_v41, %v681_v40 }
 0x399   :  { %774 = vmatmul.bf16.gmra.mxu2 %v705_v42 }
 0x39a   :  { %v672_v43 = vpop.f32.mrf.mxu1 }
 0x39b   :  { %v673_v44 = vadd.f32 %v1110_v22, %v672_v43 }
 0x39d   :  { %v683_v47 = vmax.f32 %v673_v44, 0.0 }
 0x3a2   :  { %v674_v45 = vpop.f32.mrf.mxu1 }
 0x3a3   :  { %v675_v46 = vadd.f32 %v1110_v22, %v674_v45 }
 0x3a5   :  { %v684_v48 = vmax.f32 %v675_v46, 0.0 }
 0x3a7   :  { %v706_v49 = vpack.c.bf16 %v684_v48, %v683_v47 }
 0x3a9   :  { %779 = vmatmul.bf16.vlgmr.msra.gmra.mxu3 %v706_v49 }
 0x3fc   :  { %v765_v51 = vpop.f32.mrf.mxu2 }
 0x3fd   :  { %v766_v52 = vadd.f32 %v1111_v50, %v765_v51 }
 0x3ff   :  { %785 = vst [vmem:[%s1236_s3] sm:$0xff] %v766_v52 }
 0x404   :  { %v767_v53 = vpop.f32.mrf.mxu2 }
 0x405   :  { %v768_v54 = vadd.f32 %v1111_v50, %v767_v53 }
 0x407   :  { %786 = vst [vmem:[%s1236_s3 + $0x8] sm:$0xff] %v768_v54 }
 0x40c   :  { %v770_v55 = vpop.f32.mrf.mxu2 }
 0x40d   :  { %v771_v56 = vadd.f32 %v1111_v50, %v770_v55 }
 0x40f   :  { %787 = vst [vmem:[%s1236_s3 + $0x10] sm:$0xff] %v771_v56 }
 0x414   :  { %v772_v57 = vpop.f32.mrf.mxu2 }
 0x415   :  { %v773_v58 = vadd.f32 %v1111_v50, %v772_v57 }
 0x417   :  { %788 = vst [vmem:[%s1236_s3 + $0x18] sm:$0xff] %v773_v58 }
 0x41c   :  { %v775_v59 = vpop.f32.mrf.mxu2 }
 0x41d   :  { %v776_v60 = vadd.f32 %v1111_v50, %v775_v59 }
 0x41f   :  { %789 = vst [vmem:[%s1236_s3 + $0x20] sm:$0xff] %v776_v60 }
 0x424   :  { %v777_v61 = vpop.f32.mrf.mxu2 }
 0x425   :  { %v778_v62 = vadd.f32 %v1111_v50, %v777_v61 }
 0x427   :  { %790 = vst [vmem:[%s1236_s3 + $0x28] sm:$0xff] %v778_v62 }
 0x42c   :  { %v780_v63 = vpop.f32.mrf.mxu3 }
 0x42d   :  { %v781_v0 = vadd.f32 %v1111_v50, %v780_v63 }
 0x42f   :  { %791 = vst [vmem:[%s1236_s3 + $0x30] sm:$0xff] %v781_v0 }
 0x434   :  { %v782_v1 = vpop.f32.mrf.mxu3 }
 0x435   :  { %v783_v2 = vadd.f32 %v1111_v50, %v782_v1 }
 0x437   :  { %792 = vst [vmem:[%s1236_s3 + $0x38] sm:$0xff] %v783_v2 }
 0x438   :  { %797 = vsyncpa [#allocation3], 1 }

</bundles_post_ra>
